<compile_context>
chip_gen: v6e
topology: v6e:2x2x1
jax: 0.10.0
libtpu: 0.0.40
codegen_flags: <defaults>
</compile_context>

<pallas_src>
import functools

import jax
import jax.numpy as jnp
from jax import lax
from jax.experimental import pallas as pl
from jax.experimental.pallas import tpu as pltpu

LANES = 128      # vreg lane width (fast axis)
SUBLANES = 8     # vreg sublane height for f32
STRIP_ROWS = 64  # rows per inner strip (8 vregs of x, ~24 vregs live total)


def _round_up(x, m):
    return ((x + m - 1) // m) * m


def selectnet_kernel(x_ref, w1_ref, b1_ref, w2_ref, b2_ref, o_ref, *,
                     hidden_dim, strip_rows, num_strips, unroll, use_bf16_tanh):
    # x_ref / o_ref : (block_rows, 128) f32 in VMEM (lane-dense batch).
    # w1_ref/b1_ref/w2_ref : (H,) f32 in SMEM ; b2_ref : (1,) f32 in SMEM.
    def strip_body(s, carry):
        r = pl.multiple_of(s * strip_rows, strip_rows)
        x = x_ref[pl.ds(r, strip_rows), :]          # one strip: stays in vregs

        def hidden_term(j):
            pre = x * w1_ref[j] + b1_ref[j]
            if use_bf16_tanh:
                # ~2x EUP throughput on v6e/v7x; NOT within 1e-5 of the f32 ref.
                pre = pre.astype(jnp.bfloat16)
            return jnp.tanh(pre).astype(jnp.float32) * w2_ref[j]

        # Peel the first hidden unit: no block-wide zero-fill + add.
        acc = hidden_term(0)
        for j in range(1, hidden_dim):              # H is tiny: fully unrolled
            acc = acc + hidden_term(j)

        o_ref[pl.ds(r, strip_rows), :] = jax.nn.sigmoid(acc + b2_ref[0])
        return carry

    if num_strips == 1:
        strip_body(0, 0)
    else:
        lax.fori_loop(0, num_strips, strip_body, 0, unroll=unroll)


def selectnet_forward(x, w1, b1, w2, b2, *, block_rows=2048, use_bf16_tanh=False):
    """x: (N,1); w1: (H,1); b1: (H,); w2: (1,H); b2: (1,). Returns (N,1) f32."""
    N = x.shape[0]
    H = w1.shape[0]

    # ---- wrapper-side layout glue (cheap pads / reshapes, sliced off later) ----
    # Lane-dense batch: (N,1) -> (rows, 128).
    x_flat = x.reshape(-1).astype(jnp.float32)
    pad_n = (-N) % LANES
    if pad_n:
        x_flat = jnp.pad(x_flat, (0, pad_n))
    rows = x_flat.shape[0] // LANES
    x2d = x_flat.reshape(rows, LANES)

    # Pad rows to a sublane multiple so even tiny blocks are (>=8, 128) dense.
    rows_8 = _round_up(max(rows, 1), SUBLANES)

    # Block sizing: big blocks amortize per-step overhead; cap so the grid has
    # >=2 parallel steps when there's enough work (v7x: shard across 2 TCs).
    if rows_8 <= STRIP_ROWS:
        br = rows_8
    else:
        half = _round_up((rows_8 + 1) // 2, STRIP_ROWS)
        br = max(STRIP_ROWS, min(_round_up(block_rows, STRIP_ROWS), half))

    rows_p = _round_up(rows_8, br)
    if rows_p > rows:
        x2d = jnp.pad(x2d, ((0, rows_p - rows), (0, 0)))
    grid = (rows_p // br,)

    strip_rows = min(STRIP_ROWS, br)
    num_strips = br // strip_rows
    unroll = num_strips <= 4   # short trip counts: unroll for LLO visibility

    # Tiny parameters go to SMEM (scalar reads inside the kernel).
    w1_s = w1.reshape(H).astype(jnp.float32)
    b1_s = b1.reshape(H).astype(jnp.float32)
    w2_s = w2.reshape(H).astype(jnp.float32)
    b2_s = b2.reshape(1).astype(jnp.float32)

    smem_spec = pl.BlockSpec(memory_space=pltpu.MemorySpace.SMEM)

    out2d = pl.pallas_call(
        functools.partial(
            selectnet_kernel,
            hidden_dim=H,
            strip_rows=strip_rows,
            num_strips=num_strips,
            unroll=unroll,
            use_bf16_tanh=use_bf16_tanh,
        ),
        out_shape=jax.ShapeDtypeStruct((rows_p, LANES), jnp.float32),
        grid_spec=pltpu.PrefetchScalarGridSpec(
            num_scalar_prefetch=0,
            grid=grid,
            in_specs=[
                pl.BlockSpec((br, LANES), lambda i: (i, 0)),  # x tile (lane-dense)
                smem_spec,  # w1
                smem_spec,  # b1
                smem_spec,  # w2
                smem_spec,  # b2
            ],
            out_specs=pl.BlockSpec((br, LANES), lambda i: (i, 0)),
        ),
        compiler_params=pltpu.CompilerParams(
            dimension_semantics=("parallel",),
        ),
    )(x2d, w1_s, b1_s, w2_s, b2_s)

    # Slice off padding and restore (N, 1) (metadata-only ops).
    return out2d.reshape(-1)[:N].reshape(N, 1)


def selectnet_reference(x, w1, b1, w2, b2):
    h = jnp.tanh(x @ w1.T + b1)
    z = h @ w2.T + b2
    return jax.nn.sigmoid(z)


if __name__ == "__main__":
    key = jax.random.PRNGKey(0)
    k_x, k_w1, k_w2, k_x2 = jax.random.split(key, 4)

    hidden_dim = 32     # hparams.selectnet['hidden_dim'][0]
    N = 256             # number of input points, x has shape (N, 1)

    # Deterministic parameter init matching nn.init.normal_(std=0.01), bias=0.
    w1 = 0.01 * jax.random.normal(k_w1, (hidden_dim, 1), dtype=jnp.float32)
    b1 = jnp.zeros((hidden_dim,), dtype=jnp.float32)
    w2 = 0.01 * jax.random.normal(k_w2, (1, hidden_dim), dtype=jnp.float32)
    b2 = jnp.zeros((1,), dtype=jnp.float32)

    x = jax.random.normal(k_x, (N, 1), dtype=jnp.float32)

    # Small-N path (single 8x128 block, one strip).
    out = selectnet_forward(x, w1, b1, w2, b2)
    out = jax.block_until_ready(out)
    ref = selectnet_reference(x, w1, b1, w2, b2)
    assert out.shape == (N, 1)
    assert jnp.allclose(out, ref, atol=1e-5, rtol=1e-5), "mismatch vs reference (small N)"

    # Larger-N path: exercises the multi-step parallel grid + inner strip loop.
    N2 = 33_000
    x2 = jax.random.normal(k_x2, (N2, 1), dtype=jnp.float32)
    out2 = jax.block_until_ready(selectnet_forward(x2, w1, b1, w2, b2))
    ref2 = selectnet_reference(x2, w1, b1, w2, b2)
    assert out2.shape == (N2, 1)
    assert jnp.allclose(out2, ref2, atol=1e-5, rtol=1e-5), "mismatch vs reference (large N)"

    print("KERNEL_OK")
</pallas_src>

<mosaic_0001>
module attributes {stable_mosaic.version = 11 : i64} {
  func.func @selectnet_kernel(%arg0: i32, %arg1: memref<8x128xf32, #tpu.memory_space<vmem>>, %arg2: memref<32xf32, #tpu.memory_space<smem>>, %arg3: memref<32xf32, #tpu.memory_space<smem>>, %arg4: memref<32xf32, #tpu.memory_space<smem>>, %arg5: memref<1xf32, #tpu.memory_space<smem>>, %arg6: memref<8x128xf32, #tpu.memory_space<vmem>>) attributes {dimension_semantics = [#tpu.dimension_semantics<parallel>], iteration_bounds = array<i64: 1>, scalar_prefetch = 0 : i64, scratch_operands = 0 : i64, tpu.core_type = #tpu.core_type<tc>, window_params = [{transform_indices = @transform_0, window_bounds = array<i64: 8, 128>}, {transform_indices = @transform_1, window_bounds = array<i64: 32>}, {transform_indices = @transform_2, window_bounds = array<i64: 32>}, {transform_indices = @transform_3, window_bounds = array<i64: 32>}, {transform_indices = @transform_4, window_bounds = array<i64: 1>}, {transform_indices = @transform_5, window_bounds = array<i64: 8, 128>}]} {
    %c0_i32 = arith.constant 0 : i32
    %0 = tpu.assume_multiple %c0_i32, 8 : i32
    %1 = arith.index_cast %0 : i32 to index
    %c0 = arith.constant 0 : index
    %2 = vector.load %arg1[%1, %c0] : memref<8x128xf32, #tpu.memory_space<vmem>>, vector<8x128xf32>
    %c0_0 = arith.constant 0 : index
    %3 = memref.load %arg2[%c0_0] : memref<32xf32, #tpu.memory_space<smem>>
    %4 = vector.broadcast %3 : f32 to vector<8x128xf32>
    %5 = arith.mulf %2, %4 : vector<8x128xf32>
    %c0_1 = arith.constant 0 : index
    %6 = memref.load %arg3[%c0_1] : memref<32xf32, #tpu.memory_space<smem>>
    %7 = vector.broadcast %6 : f32 to vector<8x128xf32>
    %8 = arith.addf %5, %7 : vector<8x128xf32>
    %9 = math.tanh %8 : vector<8x128xf32>
    %c0_2 = arith.constant 0 : index
    %10 = memref.load %arg4[%c0_2] : memref<32xf32, #tpu.memory_space<smem>>
    %11 = vector.broadcast %10 : f32 to vector<8x128xf32>
    %12 = arith.mulf %9, %11 : vector<8x128xf32>
    %c1 = arith.constant 1 : index
    %13 = memref.load %arg2[%c1] : memref<32xf32, #tpu.memory_space<smem>>
    %14 = vector.broadcast %13 : f32 to vector<8x128xf32>
    %15 = arith.mulf %2, %14 : vector<8x128xf32>
    %c1_3 = arith.constant 1 : index
    %16 = memref.load %arg3[%c1_3] : memref<32xf32, #tpu.memory_space<smem>>
    %17 = vector.broadcast %16 : f32 to vector<8x128xf32>
    %18 = arith.addf %15, %17 : vector<8x128xf32>
    %19 = math.tanh %18 : vector<8x128xf32>
    %c1_4 = arith.constant 1 : index
    %20 = memref.load %arg4[%c1_4] : memref<32xf32, #tpu.memory_space<smem>>
    %21 = vector.broadcast %20 : f32 to vector<8x128xf32>
    %22 = arith.mulf %19, %21 : vector<8x128xf32>
    %23 = arith.addf %12, %22 : vector<8x128xf32>
    %c2 = arith.constant 2 : index
    %24 = memref.load %arg2[%c2] : memref<32xf32, #tpu.memory_space<smem>>
    %25 = vector.broadcast %24 : f32 to vector<8x128xf32>
    %26 = arith.mulf %2, %25 : vector<8x128xf32>
    %c2_5 = arith.constant 2 : index
    %27 = memref.load %arg3[%c2_5] : memref<32xf32, #tpu.memory_space<smem>>
    %28 = vector.broadcast %27 : f32 to vector<8x128xf32>
    %29 = arith.addf %26, %28 : vector<8x128xf32>
    %30 = math.tanh %29 : vector<8x128xf32>
    %c2_6 = arith.constant 2 : index
    %31 = memref.load %arg4[%c2_6] : memref<32xf32, #tpu.memory_space<smem>>
    %32 = vector.broadcast %31 : f32 to vector<8x128xf32>
    %33 = arith.mulf %30, %32 : vector<8x128xf32>
    %34 = arith.addf %23, %33 : vector<8x128xf32>
    %c3 = arith.constant 3 : index
    %35 = memref.load %arg2[%c3] : memref<32xf32, #tpu.memory_space<smem>>
    %36 = vector.broadcast %35 : f32 to vector<8x128xf32>
    %37 = arith.mulf %2, %36 : vector<8x128xf32>
    %c3_7 = arith.constant 3 : index
    %38 = memref.load %arg3[%c3_7] : memref<32xf32, #tpu.memory_space<smem>>
    %39 = vector.broadcast %38 : f32 to vector<8x128xf32>
    %40 = arith.addf %37, %39 : vector<8x128xf32>
    %41 = math.tanh %40 : vector<8x128xf32>
    %c3_8 = arith.constant 3 : index
    %42 = memref.load %arg4[%c3_8] : memref<32xf32, #tpu.memory_space<smem>>
    %43 = vector.broadcast %42 : f32 to vector<8x128xf32>
    %44 = arith.mulf %41, %43 : vector<8x128xf32>
    %45 = arith.addf %34, %44 : vector<8x128xf32>
    %c4 = arith.constant 4 : index
    %46 = memref.load %arg2[%c4] : memref<32xf32, #tpu.memory_space<smem>>
    %47 = vector.broadcast %46 : f32 to vector<8x128xf32>
    %48 = arith.mulf %2, %47 : vector<8x128xf32>
    %c4_9 = arith.constant 4 : index
    %49 = memref.load %arg3[%c4_9] : memref<32xf32, #tpu.memory_space<smem>>
    %50 = vector.broadcast %49 : f32 to vector<8x128xf32>
    %51 = arith.addf %48, %50 : vector<8x128xf32>
    %52 = math.tanh %51 : vector<8x128xf32>
    %c4_10 = arith.constant 4 : index
    %53 = memref.load %arg4[%c4_10] : memref<32xf32, #tpu.memory_space<smem>>
    %54 = vector.broadcast %53 : f32 to vector<8x128xf32>
    %55 = arith.mulf %52, %54 : vector<8x128xf32>
    %56 = arith.addf %45, %55 : vector<8x128xf32>
    %c5 = arith.constant 5 : index
    %57 = memref.load %arg2[%c5] : memref<32xf32, #tpu.memory_space<smem>>
    %58 = vector.broadcast %57 : f32 to vector<8x128xf32>
    %59 = arith.mulf %2, %58 : vector<8x128xf32>
    %c5_11 = arith.constant 5 : index
    %60 = memref.load %arg3[%c5_11] : memref<32xf32, #tpu.memory_space<smem>>
    %61 = vector.broadcast %60 : f32 to vector<8x128xf32>
    %62 = arith.addf %59, %61 : vector<8x128xf32>
    %63 = math.tanh %62 : vector<8x128xf32>
    %c5_12 = arith.constant 5 : index
    %64 = memref.load %arg4[%c5_12] : memref<32xf32, #tpu.memory_space<smem>>
    %65 = vector.broadcast %64 : f32 to vector<8x128xf32>
    %66 = arith.mulf %63, %65 : vector<8x128xf32>
    %67 = arith.addf %56, %66 : vector<8x128xf32>
    %c6 = arith.constant 6 : index
    %68 = memref.load %arg2[%c6] : memref<32xf32, #tpu.memory_space<smem>>
    %69 = vector.broadcast %68 : f32 to vector<8x128xf32>
    %70 = arith.mulf %2, %69 : vector<8x128xf32>
    %c6_13 = arith.constant 6 : index
    %71 = memref.load %arg3[%c6_13] : memref<32xf32, #tpu.memory_space<smem>>
    %72 = vector.broadcast %71 : f32 to vector<8x128xf32>
    %73 = arith.addf %70, %72 : vector<8x128xf32>
    %74 = math.tanh %73 : vector<8x128xf32>
    %c6_14 = arith.constant 6 : index
    %75 = memref.load %arg4[%c6_14] : memref<32xf32, #tpu.memory_space<smem>>
    %76 = vector.broadcast %75 : f32 to vector<8x128xf32>
    %77 = arith.mulf %74, %76 : vector<8x128xf32>
    %78 = arith.addf %67, %77 : vector<8x128xf32>
    %c7 = arith.constant 7 : index
    %79 = memref.load %arg2[%c7] : memref<32xf32, #tpu.memory_space<smem>>
    %80 = vector.broadcast %79 : f32 to vector<8x128xf32>
    %81 = arith.mulf %2, %80 : vector<8x128xf32>
    %c7_15 = arith.constant 7 : index
    %82 = memref.load %arg3[%c7_15] : memref<32xf32, #tpu.memory_space<smem>>
    %83 = vector.broadcast %82 : f32 to vector<8x128xf32>
    %84 = arith.addf %81, %83 : vector<8x128xf32>
    %85 = math.tanh %84 : vector<8x128xf32>
    %c7_16 = arith.constant 7 : index
    %86 = memref.load %arg4[%c7_16] : memref<32xf32, #tpu.memory_space<smem>>
    %87 = vector.broadcast %86 : f32 to vector<8x128xf32>
    %88 = arith.mulf %85, %87 : vector<8x128xf32>
    %89 = arith.addf %78, %88 : vector<8x128xf32>
    %c8 = arith.constant 8 : index
    %90 = memref.load %arg2[%c8] : memref<32xf32, #tpu.memory_space<smem>>
    %91 = vector.broadcast %90 : f32 to vector<8x128xf32>
    %92 = arith.mulf %2, %91 : vector<8x128xf32>
    %c8_17 = arith.constant 8 : index
    %93 = memref.load %arg3[%c8_17] : memref<32xf32, #tpu.memory_space<smem>>
    %94 = vector.broadcast %93 : f32 to vector<8x128xf32>
    %95 = arith.addf %92, %94 : vector<8x128xf32>
    %96 = math.tanh %95 : vector<8x128xf32>
    %c8_18 = arith.constant 8 : index
    %97 = memref.load %arg4[%c8_18] : memref<32xf32, #tpu.memory_space<smem>>
    %98 = vector.broadcast %97 : f32 to vector<8x128xf32>
    %99 = arith.mulf %96, %98 : vector<8x128xf32>
    %100 = arith.addf %89, %99 : vector<8x128xf32>
    %c9 = arith.constant 9 : index
    %101 = memref.load %arg2[%c9] : memref<32xf32, #tpu.memory_space<smem>>
    %102 = vector.broadcast %101 : f32 to vector<8x128xf32>
    %103 = arith.mulf %2, %102 : vector<8x128xf32>
    %c9_19 = arith.constant 9 : index
    %104 = memref.load %arg3[%c9_19] : memref<32xf32, #tpu.memory_space<smem>>
    %105 = vector.broadcast %104 : f32 to vector<8x128xf32>
    %106 = arith.addf %103, %105 : vector<8x128xf32>
    %107 = math.tanh %106 : vector<8x128xf32>
    %c9_20 = arith.constant 9 : index
    %108 = memref.load %arg4[%c9_20] : memref<32xf32, #tpu.memory_space<smem>>
    %109 = vector.broadcast %108 : f32 to vector<8x128xf32>
    %110 = arith.mulf %107, %109 : vector<8x128xf32>
    %111 = arith.addf %100, %110 : vector<8x128xf32>
    %c10 = arith.constant 10 : index
    %112 = memref.load %arg2[%c10] : memref<32xf32, #tpu.memory_space<smem>>
    %113 = vector.broadcast %112 : f32 to vector<8x128xf32>
    %114 = arith.mulf %2, %113 : vector<8x128xf32>
    %c10_21 = arith.constant 10 : index
    %115 = memref.load %arg3[%c10_21] : memref<32xf32, #tpu.memory_space<smem>>
    %116 = vector.broadcast %115 : f32 to vector<8x128xf32>
    %117 = arith.addf %114, %116 : vector<8x128xf32>
    %118 = math.tanh %117 : vector<8x128xf32>
    %c10_22 = arith.constant 10 : index
    %119 = memref.load %arg4[%c10_22] : memref<32xf32, #tpu.memory_space<smem>>
    %120 = vector.broadcast %119 : f32 to vector<8x128xf32>
    %121 = arith.mulf %118, %120 : vector<8x128xf32>
    %122 = arith.addf %111, %121 : vector<8x128xf32>
    %c11 = arith.constant 11 : index
    %123 = memref.load %arg2[%c11] : memref<32xf32, #tpu.memory_space<smem>>
    %124 = vector.broadcast %123 : f32 to vector<8x128xf32>
    %125 = arith.mulf %2, %124 : vector<8x128xf32>
    %c11_23 = arith.constant 11 : index
    %126 = memref.load %arg3[%c11_23] : memref<32xf32, #tpu.memory_space<smem>>
    %127 = vector.broadcast %126 : f32 to vector<8x128xf32>
    %128 = arith.addf %125, %127 : vector<8x128xf32>
    %129 = math.tanh %128 : vector<8x128xf32>
    %c11_24 = arith.constant 11 : index
    %130 = memref.load %arg4[%c11_24] : memref<32xf32, #tpu.memory_space<smem>>
    %131 = vector.broadcast %130 : f32 to vector<8x128xf32>
    %132 = arith.mulf %129, %131 : vector<8x128xf32>
    %133 = arith.addf %122, %132 : vector<8x128xf32>
    %c12 = arith.constant 12 : index
    %134 = memref.load %arg2[%c12] : memref<32xf32, #tpu.memory_space<smem>>
    %135 = vector.broadcast %134 : f32 to vector<8x128xf32>
    %136 = arith.mulf %2, %135 : vector<8x128xf32>
    %c12_25 = arith.constant 12 : index
    %137 = memref.load %arg3[%c12_25] : memref<32xf32, #tpu.memory_space<smem>>
    %138 = vector.broadcast %137 : f32 to vector<8x128xf32>
    %139 = arith.addf %136, %138 : vector<8x128xf32>
    %140 = math.tanh %139 : vector<8x128xf32>
    %c12_26 = arith.constant 12 : index
    %141 = memref.load %arg4[%c12_26] : memref<32xf32, #tpu.memory_space<smem>>
    %142 = vector.broadcast %141 : f32 to vector<8x128xf32>
    %143 = arith.mulf %140, %142 : vector<8x128xf32>
    %144 = arith.addf %133, %143 : vector<8x128xf32>
    %c13 = arith.constant 13 : index
    %145 = memref.load %arg2[%c13] : memref<32xf32, #tpu.memory_space<smem>>
    %146 = vector.broadcast %145 : f32 to vector<8x128xf32>
    %147 = arith.mulf %2, %146 : vector<8x128xf32>
    %c13_27 = arith.constant 13 : index
    %148 = memref.load %arg3[%c13_27] : memref<32xf32, #tpu.memory_space<smem>>
    %149 = vector.broadcast %148 : f32 to vector<8x128xf32>
    %150 = arith.addf %147, %149 : vector<8x128xf32>
    %151 = math.tanh %150 : vector<8x128xf32>
    %c13_28 = arith.constant 13 : index
    %152 = memref.load %arg4[%c13_28] : memref<32xf32, #tpu.memory_space<smem>>
    %153 = vector.broadcast %152 : f32 to vector<8x128xf32>
    %154 = arith.mulf %151, %153 : vector<8x128xf32>
    %155 = arith.addf %144, %154 : vector<8x128xf32>
    %c14 = arith.constant 14 : index
    %156 = memref.load %arg2[%c14] : memref<32xf32, #tpu.memory_space<smem>>
    %157 = vector.broadcast %156 : f32 to vector<8x128xf32>
    %158 = arith.mulf %2, %157 : vector<8x128xf32>
    %c14_29 = arith.constant 14 : index
    %159 = memref.load %arg3[%c14_29] : memref<32xf32, #tpu.memory_space<smem>>
    %160 = vector.broadcast %159 : f32 to vector<8x128xf32>
    %161 = arith.addf %158, %160 : vector<8x128xf32>
    %162 = math.tanh %161 : vector<8x128xf32>
    %c14_30 = arith.constant 14 : index
    %163 = memref.load %arg4[%c14_30] : memref<32xf32, #tpu.memory_space<smem>>
    %164 = vector.broadcast %163 : f32 to vector<8x128xf32>
    %165 = arith.mulf %162, %164 : vector<8x128xf32>
    %166 = arith.addf %155, %165 : vector<8x128xf32>
    %c15 = arith.constant 15 : index
    %167 = memref.load %arg2[%c15] : memref<32xf32, #tpu.memory_space<smem>>
    %168 = vector.broadcast %167 : f32 to vector<8x128xf32>
    %169 = arith.mulf %2, %168 : vector<8x128xf32>
    %c15_31 = arith.constant 15 : index
    %170 = memref.load %arg3[%c15_31] : memref<32xf32, #tpu.memory_space<smem>>
    %171 = vector.broadcast %170 : f32 to vector<8x128xf32>
    %172 = arith.addf %169, %171 : vector<8x128xf32>
    %173 = math.tanh %172 : vector<8x128xf32>
    %c15_32 = arith.constant 15 : index
    %174 = memref.load %arg4[%c15_32] : memref<32xf32, #tpu.memory_space<smem>>
    %175 = vector.broadcast %174 : f32 to vector<8x128xf32>
    %176 = arith.mulf %173, %175 : vector<8x128xf32>
    %177 = arith.addf %166, %176 : vector<8x128xf32>
    %c16 = arith.constant 16 : index
    %178 = memref.load %arg2[%c16] : memref<32xf32, #tpu.memory_space<smem>>
    %179 = vector.broadcast %178 : f32 to vector<8x128xf32>
    %180 = arith.mulf %2, %179 : vector<8x128xf32>
    %c16_33 = arith.constant 16 : index
    %181 = memref.load %arg3[%c16_33] : memref<32xf32, #tpu.memory_space<smem>>
    %182 = vector.broadcast %181 : f32 to vector<8x128xf32>
    %183 = arith.addf %180, %182 : vector<8x128xf32>
    %184 = math.tanh %183 : vector<8x128xf32>
    %c16_34 = arith.constant 16 : index
    %185 = memref.load %arg4[%c16_34] : memref<32xf32, #tpu.memory_space<smem>>
    %186 = vector.broadcast %185 : f32 to vector<8x128xf32>
    %187 = arith.mulf %184, %186 : vector<8x128xf32>
    %188 = arith.addf %177, %187 : vector<8x128xf32>
    %c17 = arith.constant 17 : index
    %189 = memref.load %arg2[%c17] : memref<32xf32, #tpu.memory_space<smem>>
    %190 = vector.broadcast %189 : f32 to vector<8x128xf32>
    %191 = arith.mulf %2, %190 : vector<8x128xf32>
    %c17_35 = arith.constant 17 : index
    %192 = memref.load %arg3[%c17_35] : memref<32xf32, #tpu.memory_space<smem>>
    %193 = vector.broadcast %192 : f32 to vector<8x128xf32>
    %194 = arith.addf %191, %193 : vector<8x128xf32>
    %195 = math.tanh %194 : vector<8x128xf32>
    %c17_36 = arith.constant 17 : index
    %196 = memref.load %arg4[%c17_36] : memref<32xf32, #tpu.memory_space<smem>>
    %197 = vector.broadcast %196 : f32 to vector<8x128xf32>
    %198 = arith.mulf %195, %197 : vector<8x128xf32>
    %199 = arith.addf %188, %198 : vector<8x128xf32>
    %c18 = arith.constant 18 : index
    %200 = memref.load %arg2[%c18] : memref<32xf32, #tpu.memory_space<smem>>
    %201 = vector.broadcast %200 : f32 to vector<8x128xf32>
    %202 = arith.mulf %2, %201 : vector<8x128xf32>
    %c18_37 = arith.constant 18 : index
    %203 = memref.load %arg3[%c18_37] : memref<32xf32, #tpu.memory_space<smem>>
    %204 = vector.broadcast %203 : f32 to vector<8x128xf32>
    %205 = arith.addf %202, %204 : vector<8x128xf32>
    %206 = math.tanh %205 : vector<8x128xf32>
    %c18_38 = arith.constant 18 : index
    %207 = memref.load %arg4[%c18_38] : memref<32xf32, #tpu.memory_space<smem>>
    %208 = vector.broadcast %207 : f32 to vector<8x128xf32>
    %209 = arith.mulf %206, %208 : vector<8x128xf32>
    %210 = arith.addf %199, %209 : vector<8x128xf32>
    %c19 = arith.constant 19 : index
    %211 = memref.load %arg2[%c19] : memref<32xf32, #tpu.memory_space<smem>>
    %212 = vector.broadcast %211 : f32 to vector<8x128xf32>
    %213 = arith.mulf %2, %212 : vector<8x128xf32>
    %c19_39 = arith.constant 19 : index
    %214 = memref.load %arg3[%c19_39] : memref<32xf32, #tpu.memory_space<smem>>
    %215 = vector.broadcast %214 : f32 to vector<8x128xf32>
    %216 = arith.addf %213, %215 : vector<8x128xf32>
    %217 = math.tanh %216 : vector<8x128xf32>
    %c19_40 = arith.constant 19 : index
    %218 = memref.load %arg4[%c19_40] : memref<32xf32, #tpu.memory_space<smem>>
    %219 = vector.broadcast %218 : f32 to vector<8x128xf32>
    %220 = arith.mulf %217, %219 : vector<8x128xf32>
    %221 = arith.addf %210, %220 : vector<8x128xf32>
    %c20 = arith.constant 20 : index
    %222 = memref.load %arg2[%c20] : memref<32xf32, #tpu.memory_space<smem>>
    %223 = vector.broadcast %222 : f32 to vector<8x128xf32>
    %224 = arith.mulf %2, %223 : vector<8x128xf32>
    %c20_41 = arith.constant 20 : index
    %225 = memref.load %arg3[%c20_41] : memref<32xf32, #tpu.memory_space<smem>>
    %226 = vector.broadcast %225 : f32 to vector<8x128xf32>
    %227 = arith.addf %224, %226 : vector<8x128xf32>
    %228 = math.tanh %227 : vector<8x128xf32>
    %c20_42 = arith.constant 20 : index
    %229 = memref.load %arg4[%c20_42] : memref<32xf32, #tpu.memory_space<smem>>
    %230 = vector.broadcast %229 : f32 to vector<8x128xf32>
    %231 = arith.mulf %228, %230 : vector<8x128xf32>
    %232 = arith.addf %221, %231 : vector<8x128xf32>
    %c21 = arith.constant 21 : index
    %233 = memref.load %arg2[%c21] : memref<32xf32, #tpu.memory_space<smem>>
    %234 = vector.broadcast %233 : f32 to vector<8x128xf32>
    %235 = arith.mulf %2, %234 : vector<8x128xf32>
    %c21_43 = arith.constant 21 : index
    %236 = memref.load %arg3[%c21_43] : memref<32xf32, #tpu.memory_space<smem>>
    %237 = vector.broadcast %236 : f32 to vector<8x128xf32>
    %238 = arith.addf %235, %237 : vector<8x128xf32>
    %239 = math.tanh %238 : vector<8x128xf32>
    %c21_44 = arith.constant 21 : index
    %240 = memref.load %arg4[%c21_44] : memref<32xf32, #tpu.memory_space<smem>>
    %241 = vector.broadcast %240 : f32 to vector<8x128xf32>
    %242 = arith.mulf %239, %241 : vector<8x128xf32>
    %243 = arith.addf %232, %242 : vector<8x128xf32>
    %c22 = arith.constant 22 : index
    %244 = memref.load %arg2[%c22] : memref<32xf32, #tpu.memory_space<smem>>
    %245 = vector.broadcast %244 : f32 to vector<8x128xf32>
    %246 = arith.mulf %2, %245 : vector<8x128xf32>
    %c22_45 = arith.constant 22 : index
    %247 = memref.load %arg3[%c22_45] : memref<32xf32, #tpu.memory_space<smem>>
    %248 = vector.broadcast %247 : f32 to vector<8x128xf32>
    %249 = arith.addf %246, %248 : vector<8x128xf32>
    %250 = math.tanh %249 : vector<8x128xf32>
    %c22_46 = arith.constant 22 : index
    %251 = memref.load %arg4[%c22_46] : memref<32xf32, #tpu.memory_space<smem>>
    %252 = vector.broadcast %251 : f32 to vector<8x128xf32>
    %253 = arith.mulf %250, %252 : vector<8x128xf32>
    %254 = arith.addf %243, %253 : vector<8x128xf32>
    %c23 = arith.constant 23 : index
    %255 = memref.load %arg2[%c23] : memref<32xf32, #tpu.memory_space<smem>>
    %256 = vector.broadcast %255 : f32 to vector<8x128xf32>
    %257 = arith.mulf %2, %256 : vector<8x128xf32>
    %c23_47 = arith.constant 23 : index
    %258 = memref.load %arg3[%c23_47] : memref<32xf32, #tpu.memory_space<smem>>
    %259 = vector.broadcast %258 : f32 to vector<8x128xf32>
    %260 = arith.addf %257, %259 : vector<8x128xf32>
    %261 = math.tanh %260 : vector<8x128xf32>
    %c23_48 = arith.constant 23 : index
    %262 = memref.load %arg4[%c23_48] : memref<32xf32, #tpu.memory_space<smem>>
    %263 = vector.broadcast %262 : f32 to vector<8x128xf32>
    %264 = arith.mulf %261, %263 : vector<8x128xf32>
    %265 = arith.addf %254, %264 : vector<8x128xf32>
    %c24 = arith.constant 24 : index
    %266 = memref.load %arg2[%c24] : memref<32xf32, #tpu.memory_space<smem>>
    %267 = vector.broadcast %266 : f32 to vector<8x128xf32>
    %268 = arith.mulf %2, %267 : vector<8x128xf32>
    %c24_49 = arith.constant 24 : index
    %269 = memref.load %arg3[%c24_49] : memref<32xf32, #tpu.memory_space<smem>>
    %270 = vector.broadcast %269 : f32 to vector<8x128xf32>
    %271 = arith.addf %268, %270 : vector<8x128xf32>
    %272 = math.tanh %271 : vector<8x128xf32>
    %c24_50 = arith.constant 24 : index
    %273 = memref.load %arg4[%c24_50] : memref<32xf32, #tpu.memory_space<smem>>
    %274 = vector.broadcast %273 : f32 to vector<8x128xf32>
    %275 = arith.mulf %272, %274 : vector<8x128xf32>
    %276 = arith.addf %265, %275 : vector<8x128xf32>
    %c25 = arith.constant 25 : index
    %277 = memref.load %arg2[%c25] : memref<32xf32, #tpu.memory_space<smem>>
    %278 = vector.broadcast %277 : f32 to vector<8x128xf32>
    %279 = arith.mulf %2, %278 : vector<8x128xf32>
    %c25_51 = arith.constant 25 : index
    %280 = memref.load %arg3[%c25_51] : memref<32xf32, #tpu.memory_space<smem>>
    %281 = vector.broadcast %280 : f32 to vector<8x128xf32>
    %282 = arith.addf %279, %281 : vector<8x128xf32>
    %283 = math.tanh %282 : vector<8x128xf32>
    %c25_52 = arith.constant 25 : index
    %284 = memref.load %arg4[%c25_52] : memref<32xf32, #tpu.memory_space<smem>>
    %285 = vector.broadcast %284 : f32 to vector<8x128xf32>
    %286 = arith.mulf %283, %285 : vector<8x128xf32>
    %287 = arith.addf %276, %286 : vector<8x128xf32>
    %c26 = arith.constant 26 : index
    %288 = memref.load %arg2[%c26] : memref<32xf32, #tpu.memory_space<smem>>
    %289 = vector.broadcast %288 : f32 to vector<8x128xf32>
    %290 = arith.mulf %2, %289 : vector<8x128xf32>
    %c26_53 = arith.constant 26 : index
    %291 = memref.load %arg3[%c26_53] : memref<32xf32, #tpu.memory_space<smem>>
    %292 = vector.broadcast %291 : f32 to vector<8x128xf32>
    %293 = arith.addf %290, %292 : vector<8x128xf32>
    %294 = math.tanh %293 : vector<8x128xf32>
    %c26_54 = arith.constant 26 : index
    %295 = memref.load %arg4[%c26_54] : memref<32xf32, #tpu.memory_space<smem>>
    %296 = vector.broadcast %295 : f32 to vector<8x128xf32>
    %297 = arith.mulf %294, %296 : vector<8x128xf32>
    %298 = arith.addf %287, %297 : vector<8x128xf32>
    %c27 = arith.constant 27 : index
    %299 = memref.load %arg2[%c27] : memref<32xf32, #tpu.memory_space<smem>>
    %300 = vector.broadcast %299 : f32 to vector<8x128xf32>
    %301 = arith.mulf %2, %300 : vector<8x128xf32>
    %c27_55 = arith.constant 27 : index
    %302 = memref.load %arg3[%c27_55] : memref<32xf32, #tpu.memory_space<smem>>
    %303 = vector.broadcast %302 : f32 to vector<8x128xf32>
    %304 = arith.addf %301, %303 : vector<8x128xf32>
    %305 = math.tanh %304 : vector<8x128xf32>
    %c27_56 = arith.constant 27 : index
    %306 = memref.load %arg4[%c27_56] : memref<32xf32, #tpu.memory_space<smem>>
    %307 = vector.broadcast %306 : f32 to vector<8x128xf32>
    %308 = arith.mulf %305, %307 : vector<8x128xf32>
    %309 = arith.addf %298, %308 : vector<8x128xf32>
    %c28 = arith.constant 28 : index
    %310 = memref.load %arg2[%c28] : memref<32xf32, #tpu.memory_space<smem>>
    %311 = vector.broadcast %310 : f32 to vector<8x128xf32>
    %312 = arith.mulf %2, %311 : vector<8x128xf32>
    %c28_57 = arith.constant 28 : index
    %313 = memref.load %arg3[%c28_57] : memref<32xf32, #tpu.memory_space<smem>>
    %314 = vector.broadcast %313 : f32 to vector<8x128xf32>
    %315 = arith.addf %312, %314 : vector<8x128xf32>
    %316 = math.tanh %315 : vector<8x128xf32>
    %c28_58 = arith.constant 28 : index
    %317 = memref.load %arg4[%c28_58] : memref<32xf32, #tpu.memory_space<smem>>
    %318 = vector.broadcast %317 : f32 to vector<8x128xf32>
    %319 = arith.mulf %316, %318 : vector<8x128xf32>
    %320 = arith.addf %309, %319 : vector<8x128xf32>
    %c29 = arith.constant 29 : index
    %321 = memref.load %arg2[%c29] : memref<32xf32, #tpu.memory_space<smem>>
    %322 = vector.broadcast %321 : f32 to vector<8x128xf32>
    %323 = arith.mulf %2, %322 : vector<8x128xf32>
    %c29_59 = arith.constant 29 : index
    %324 = memref.load %arg3[%c29_59] : memref<32xf32, #tpu.memory_space<smem>>
    %325 = vector.broadcast %324 : f32 to vector<8x128xf32>
    %326 = arith.addf %323, %325 : vector<8x128xf32>
    %327 = math.tanh %326 : vector<8x128xf32>
    %c29_60 = arith.constant 29 : index
    %328 = memref.load %arg4[%c29_60] : memref<32xf32, #tpu.memory_space<smem>>
    %329 = vector.broadcast %328 : f32 to vector<8x128xf32>
    %330 = arith.mulf %327, %329 : vector<8x128xf32>
    %331 = arith.addf %320, %330 : vector<8x128xf32>
    %c30 = arith.constant 30 : index
    %332 = memref.load %arg2[%c30] : memref<32xf32, #tpu.memory_space<smem>>
    %333 = vector.broadcast %332 : f32 to vector<8x128xf32>
    %334 = arith.mulf %2, %333 : vector<8x128xf32>
    %c30_61 = arith.constant 30 : index
    %335 = memref.load %arg3[%c30_61] : memref<32xf32, #tpu.memory_space<smem>>
    %336 = vector.broadcast %335 : f32 to vector<8x128xf32>
    %337 = arith.addf %334, %336 : vector<8x128xf32>
    %338 = math.tanh %337 : vector<8x128xf32>
    %c30_62 = arith.constant 30 : index
    %339 = memref.load %arg4[%c30_62] : memref<32xf32, #tpu.memory_space<smem>>
    %340 = vector.broadcast %339 : f32 to vector<8x128xf32>
    %341 = arith.mulf %338, %340 : vector<8x128xf32>
    %342 = arith.addf %331, %341 : vector<8x128xf32>
    %c31 = arith.constant 31 : index
    %343 = memref.load %arg2[%c31] : memref<32xf32, #tpu.memory_space<smem>>
    %344 = vector.broadcast %343 : f32 to vector<8x128xf32>
    %345 = arith.mulf %2, %344 : vector<8x128xf32>
    %c31_63 = arith.constant 31 : index
    %346 = memref.load %arg3[%c31_63] : memref<32xf32, #tpu.memory_space<smem>>
    %347 = vector.broadcast %346 : f32 to vector<8x128xf32>
    %348 = arith.addf %345, %347 : vector<8x128xf32>
    %349 = math.tanh %348 : vector<8x128xf32>
    %c31_64 = arith.constant 31 : index
    %350 = memref.load %arg4[%c31_64] : memref<32xf32, #tpu.memory_space<smem>>
    %351 = vector.broadcast %350 : f32 to vector<8x128xf32>
    %352 = arith.mulf %349, %351 : vector<8x128xf32>
    %353 = arith.addf %342, %352 : vector<8x128xf32>
    %c0_65 = arith.constant 0 : index
    %354 = memref.load %arg5[%c0_65] : memref<1xf32, #tpu.memory_space<smem>>
    %355 = vector.broadcast %354 : f32 to vector<8x128xf32>
    %356 = arith.addf %353, %355 : vector<8x128xf32>
    %357 = arith.negf %356 : vector<8x128xf32>
    %358 = math.exp %357 : vector<8x128xf32>
    %cst = arith.constant 1.000000e+00 : f32
    %359 = vector.broadcast %cst : f32 to vector<8x128xf32>
    %360 = arith.addf %359, %358 : vector<8x128xf32>
    %361 = arith.divf %359, %360 : vector<8x128xf32>
    %362 = arith.index_cast %0 : i32 to index
    %c0_66 = arith.constant 0 : index
    %363 = vector.load %arg6[%362, %c0_66] : memref<8x128xf32, #tpu.memory_space<vmem>>, vector<8x128xf32>
    tpu.vector_store %arg6[%362, %c0_66], %361 {strides = array<i32>} : memref<8x128xf32, #tpu.memory_space<vmem>>, vector<8x128xf32>,
    return
  }
  func.func @transform_0(%arg0: i32) -> (i32, i32) {
    %c0_i32 = arith.constant 0 : i32
    %c0_i32_0 = arith.constant 0 : i32
    return %arg0, %c0_i32 : i32, i32
  }
  func.func @transform_1(%arg0: i32) -> i32 {
    %c0_i32 = arith.constant 0 : i32
    %c0_i32_0 = arith.constant 0 : i32
    return %c0_i32 : i32
  }
  func.func @transform_2(%arg0: i32) -> i32 {
    %c0_i32 = arith.constant 0 : i32
    %c0_i32_0 = arith.constant 0 : i32
    return %c0_i32 : i32
  }
  func.func @transform_3(%arg0: i32) -> i32 {
    %c0_i32 = arith.constant 0 : i32
    %c0_i32_0 = arith.constant 0 : i32
    return %c0_i32 : i32
  }
  func.func @transform_4(%arg0: i32) -> i32 {
    %c0_i32 = arith.constant 0 : i32
    %c0_i32_0 = arith.constant 0 : i32
    return %c0_i32 : i32
  }
  func.func @transform_5(%arg0: i32) -> (i32, i32) {
    %c0_i32 = arith.constant 0 : i32
    %c0_i32_0 = arith.constant 0 : i32
    return %arg0, %c0_i32 : i32, i32
  }
}

</mosaic_0001>

<bundles_post_ra>
// kernel: tpu_custom_call.1
= control target key start
LH: loop header
LB: loop body
LE: loop exit
PB: predicated region body
PF: predicated region fallthrough
CT: control target
= control target key end

     0   :  { %11 = vsyncpa [#allocation4], 0  ;;  %s871_s0 = inlined_call_operand.hbm [shape: f32[8,128], index: 0, kind: input, shape index: {}]   ;;  %s872_s1 = inlined_call_operand.vmem [shape: f32[32], index: 1, kind: input, shape index: {}]   ;;  %s873_s2 = inlined_call_operand.vmem [shape: f32[32], index: 2, kind: input, shape index: {}]   ;;  %s874_s3 = inlined_call_operand.vmem [shape: f32[32], index: 3, kind: input, shape index: {}]   ;;  %s875_s4 = inlined_call_operand.<no memory space> [shape: f32[1], index: 4, kind: input, shape index: {}]   ;;  %s876_s5 = inlined_call_operand.hbm [shape: f32[8,128], index: 5, kind: output, shape index: {}]  }
   0x1   :  { %12 = vsyncpa [#allocation6], 0 }
   0x2   :  { %13 = vsyncpa [#allocation9], 0  ;;  %s41_s20 = sshll.u32 %s873_s2, 4  ;;  %s42_s20 = int_to_ptr.vmem [resolvable:$true] %s41_s20 }
   0x3   :  { %14 = vsyncpa [#allocation5], 0  ;;  %s616_s21 = scalar_lea.vmem %s42_s20, 16  ;;  %p621_p1 = scmp.lt.s32.totalorder %s42_s20, %s42_s20 }
   0x4   :  { %p617_p0 = scmp.ne.s32.totalorder %s42_s20, %s616_s21  ;;  %p622_p2 = scmp.lt.s32.totalorder %s616_s21, %s616_s21 }
   0x6   :  { %p623_p3 = por %p622_p2, %p621_p1 }
   0x8   :  { %p624_p4 = pnand %p623_p3, %p617_p0 }
   0xa   :  { %627 = shalt.err (!%p624_p4)
}
   0xb   :  { %s700_s22 = smov [#allocation8]   ;;  %s701_s23 = smov [#allocation3]  }
   0xc   :  { %44 = dma.vmem_to_smem %s42_s20, 16, %s700_s22, [#allocation9]  }
   0xd   :  { %s21_s24 = sshll.u32 %s701_s23, 4  ;;  %s31_s27 = sshll.u32 %s872_s1, 4  ;;  %s22_s24 = int_to_ptr.vmem [resolvable:$true] %s21_s24  ;;  %s32_s27 = int_to_ptr.vmem [resolvable:$true] %s31_s27 }
   0xe   :  { %s636_s2 = scalar_lea.vmem %s22_s24, 128  ;;  %p641_p6 = scmp.lt.s32.totalorder %s22_s24, %s22_s24 }
   0xf   :  { %p637_p5 = scmp.ne.s32.totalorder %s22_s24, %s636_s2  ;;  %p642_p7 = scmp.lt.s32.totalorder %s636_s2, %s636_s2 }
  0x11   :  { %p643_p8 = por %p642_p7, %p641_p6 }
  0x13   :  { %p644_p9 = pnand %p643_p8, %p637_p5 }
  0x15   :  { %647 = shalt.err (!%p644_p9)
}
  0x16   :  { %24 = dma.hbm_to_vmem [thread:$0]  %s871_s0, 128, %s22_s24, [#allocation4]  }
  0x17   :  { %s51_s7 = sshll.u32 %s874_s3, 4  ;;  %s648_s8 = scalar_lea.vmem %s32_s27, 16  ;;  %s52_s7 = int_to_ptr.vmem [resolvable:$true] %s51_s7 }
  0x18   :  { %p649_p10 = scmp.ne.s32.totalorder %s32_s27, %s648_s8  ;;  %p653_p11 = scmp.lt.s32.totalorder %s32_s27, %s32_s27 }
  0x19   :  { %p654_p12 = scmp.lt.s32.totalorder %s648_s8, %s648_s8 }
  0x1b   :  { %p655_p13 = por %p654_p12, %p653_p11 }
  0x1d   :  { %p656_p0 = pnand %p655_p13, %p649_p10 }
  0x1f   :  { %659 = shalt.err (!%p656_p0)
}
  0x20   :  { %s702_s1 = smov [#allocation7]   ;;  %s660_s9 = scalar_lea.vmem %s52_s7, 16 }
  0x21   :  { %34 = dma.vmem_to_smem %s32_s27, 16, %s702_s1, [#allocation6]  }
  0x22   :  { %p661_p1 = scmp.ne.s32.totalorder %s52_s7, %s660_s9  ;;  %p665_p2 = scmp.lt.s32.totalorder %s52_s7, %s52_s7 }
  0x23   :  { %p666_p3 = scmp.lt.s32.totalorder %s660_s9, %s660_s9 }
  0x25   :  { %p667_p4 = por %p666_p3, %p665_p2 }
  0x27   :  { %p668_p5 = pnand %p667_p4, %p661_p1 }
  0x29   :  { %671 = shalt.err (!%p668_p5)
}
  0x2a   :  { %s703_s0 = smov [#allocation10]  }
  0x2b   :  { %54 = dma.vmem_to_smem %s52_s7, 16, %s703_s0, [#allocation9]  }
  0x2c   :  { %692 = dma.done.wait [#allocation4], 128  }
  0x2d   :  { %693 = vsyncadd [#allocation4], 4294967168 }
  0x2e   :  { %694 = dma.done.wait [#allocation6], 16  }
  0x2f   :  { %695 = vsyncadd [#allocation6], 4294967280 }
  0x30   :  { %696 = dma.done.wait [#allocation9], 32  }
  0x31   :  { %697 = vsyncadd [#allocation9], 4294967264 }
  0x32   :  { %69 = sfence }
  0x33   :  { %s71_s3 = sld [smem:[#allocation7]]  ;;  %v747_v0 = vld [vmem:[#allocation3] sm:$0xff] }
  0x34   :  { %s74_s10 = sld [smem:[#allocation8]] }
  0x35   :  { %s449_s11 = sld [smem:[#allocation7 + $0x1]] }
  0x36   :  { %s450_s12 = sld [smem:[#allocation8 + $0x1]] }
  0x37   :  { %s452_s13 = sld [smem:[#allocation7 + $0x2]] }
  0x38   :  { %s453_s14 = sld [smem:[#allocation8 + $0x2]] }
  0x39   :  { %v72_v1 = vstv %s71_s3  ;;  %s455_s15 = sld [smem:[#allocation7 + $0x3]] }
  0x3a   :  { %v73_v2 = vmul.f32 %v72_v1, %v747_v0  ;;  %v75_v3 = vstv %s74_s10  ;;  %s456_s16 = sld [smem:[#allocation8 + $0x3]] }
  0x3b   :  { %v82_v5 = vstv %s449_s11  ;;  %s458_s17 = sld [smem:[#allocation7 + $0x4]] }
  0x3c   :  { %v76_v4 = vadd.f32 %v75_v3, %v73_v2  ;;  %v83_v6 = vmul.f32 %v82_v5, %v747_v0  ;;  %v85_v7 = vstv %s450_s12  ;;  %s459_s18 = sld [smem:[#allocation8 + $0x4]] }
  0x3d   :  { %v93_v9 = vstv %s452_s13  ;;  %s752_s19 = sld [smem:[#allocation10]] }
  0x3e   :  { %548 = vtanh.f32 %v76_v4  ;;  %v86_v8 = vadd.f32 %v85_v7, %v83_v6  ;;  %v94_v10 = vmul.f32 %v93_v9, %v747_v0  ;;  %v96_v11 = vstv %s453_s14  ;;  %s461_s20 = sld [smem:[#allocation7 + $0x5]] }
  0x3f   :  { %v104_v13 = vstv %s455_s15  ;;  %s462_s21 = sld [smem:[#allocation8 + $0x5]] }
  0x40   :  { %550 = vtanh.f32 %v86_v8  ;;  %v97_v12 = vadd.f32 %v96_v11, %v94_v10  ;;  %v105_v14 = vmul.f32 %v104_v13, %v747_v0  ;;  %v107_v15 = vstv %s456_s16  ;;  %s755_s22 = sld [smem:[#allocation10 + $0x1]] }
  0x41   :  { %v115_v17 = vstv %s458_s17  ;;  %s464_s23 = sld [smem:[#allocation7 + $0x6]] }
  0x42   :  { %552 = vtanh.f32 %v97_v12  ;;  %v108_v16 = vadd.f32 %v107_v15, %v105_v14  ;;  %v116_v18 = vmul.f32 %v115_v17, %v747_v0  ;;  %v118_v19 = vstv %s459_s18  ;;  %s465_s24 = sld [smem:[#allocation8 + $0x6]] }
  0x43   :  { %s758_s25 = sld [smem:[#allocation10 + $0x2]]  ;;  %v79_v24 = vstv %s752_s19 }
  0x44   :  { %554 = vtanh.f32 %v108_v16  ;;  %v119_v20 = vadd.f32 %v118_v19, %v116_v18  ;;  %v126_v21 = vstv %s461_s20  ;;  %s467_s26 = sld [smem:[#allocation7 + $0x7]] }
  0x45   :  { %v127_v22 = vmul.f32 %v126_v21, %v747_v0  ;;  %v129_v23 = vstv %s462_s21  ;;  %s468_s27 = sld [smem:[#allocation8 + $0x7]] }
  0x46   :  { %s762_s2 = sld [smem:[#allocation10 + $0x3]]  ;;  %556 = vtanh.f32 %v119_v20  ;;  %v89_v28 = vstv %s755_s22 }
  0x47   :  { %v130_v26 = vadd.f32 %v129_v23, %v127_v22  ;;  %v137_v27 = vstv %s464_s23  ;;  %s470_s28 = sld [smem:[#allocation7 + $0x8]] }
  0x48   :  { %v138_v29 = vmul.f32 %v137_v27, %v747_v0  ;;  %v140_v30 = vstv %s465_s24  ;;  %s471_s29 = sld [smem:[#allocation8 + $0x8]] }
  0x49   :  { %s766_s30 = sld [smem:[#allocation10 + $0x4]]  ;;  %558 = vtanh.f32 %v130_v26  ;;  %v100_v36 = vstv %s758_s25 }
  0x4a   :  { %v141_v33 = vadd.f32 %v140_v30, %v138_v29  ;;  %v148_v34 = vstv %s467_s26  ;;  %s473_s6 = sld [smem:[#allocation7 + $0x9]] }
  0x4b   :  { %v549_v25 = vpop.eup %548  ;;  %v149_v37 = vmul.f32 %v148_v34, %v747_v0  ;;  %v151_v38 = vstv %s468_s27  ;;  %s474_s7 = sld [smem:[#allocation8 + $0x9]] }
  0x4c   :  { %v80_v31 = vmul.f32 %v549_v25, %v79_v24  ;;  %s770_s8 = sld [smem:[#allocation10 + $0x5]]  ;;  %560 = vtanh.f32 %v141_v33  ;;  %v111_v44 = vstv %s762_s2 }
  0x4d   :  { %v551_v32 = vpop.eup %550  ;;  %v152_v41 = vadd.f32 %v151_v38, %v149_v37  ;;  %v159_v42 = vstv %s470_s28  ;;  %s476_s1 = sld [smem:[#allocation7 + $0xa]] }
  0x4e   :  { %v90_v35 = vmul.f32 %v551_v32, %v89_v28  ;;  %v160_v45 = vmul.f32 %v159_v42, %v747_v0  ;;  %v162_v46 = vstv %s471_s29  ;;  %s477_s9 = sld [smem:[#allocation8 + $0xa]] }
  0x4f   :  { %v553_v39 = vpop.eup %552  ;;  %s774_s0 = sld [smem:[#allocation10 + $0x6]]  ;;  %562 = vtanh.f32 %v152_v41  ;;  %v122_v52 = vstv %s766_s30 }
  0x50   :  { %v91_v40 = vadd.f32 %v90_v35, %v80_v31  ;;  %v101_v43 = vmul.f32 %v553_v39, %v100_v36  ;;  %v163_v49 = vadd.f32 %v162_v46, %v160_v45  ;;  %v170_v50 = vstv %s473_s6  ;;  %s479_s3 = sld [smem:[#allocation7 + $0xb]] }
  0x51   :  { %v555_v47 = vpop.eup %554  ;;  %v171_v53 = vmul.f32 %v170_v50, %v747_v0  ;;  %v173_v54 = vstv %s474_s7  ;;  %s480_s10 = sld [smem:[#allocation8 + $0xb]] }
  0x52   :  { %v102_v48 = vadd.f32 %v101_v43, %v91_v40  ;;  %v112_v51 = vmul.f32 %v555_v47, %v111_v44  ;;  %s778_s11 = sld [smem:[#allocation10 + $0x7]]  ;;  %564 = vtanh.f32 %v163_v49  ;;  %v133_v60 = vstv %s770_s8 }
  0x53   :  { %v557_v55 = vpop.eup %556  ;;  %v174_v57 = vadd.f32 %v173_v54, %v171_v53  ;;  %v181_v58 = vstv %s476_s1  ;;  %s482_s12 = sld [smem:[#allocation7 + $0xc]] }
  0x54   :  { %v113_v56 = vadd.f32 %v112_v51, %v102_v48  ;;  %v123_v59 = vmul.f32 %v557_v55, %v122_v52  ;;  %v182_v61 = vmul.f32 %v181_v58, %v747_v0  ;;  %v184_v62 = vstv %s477_s9  ;;  %s483_s13 = sld [smem:[#allocation8 + $0xc]] }
  0x55   :  { %s782_s14 = sld [smem:[#allocation10 + $0x8]]  ;;  %566 = vtanh.f32 %v174_v57  ;;  %v144_v5 = vstv %s774_s0 }
  0x56   :  { %v559_v63 = vpop.eup %558  ;;  %v124_v1 = vadd.f32 %v123_v59, %v113_v56  ;;  %v185_v2 = vadd.f32 %v184_v62, %v182_v61  ;;  %v192_v3 = vstv %s479_s3  ;;  %s485_s15 = sld [smem:[#allocation7 + $0xd]] }
  0x57   :  { %v134_v4 = vmul.f32 %v559_v63, %v133_v60  ;;  %v193_v6 = vmul.f32 %v192_v3, %v747_v0  ;;  %v195_v7 = vstv %s480_s10  ;;  %s486_s16 = sld [smem:[#allocation8 + $0xd]] }
  0x58   :  { %s786_s17 = sld [smem:[#allocation10 + $0x9]]  ;;  %568 = vtanh.f32 %v185_v2  ;;  %v155_v13 = vstv %s778_s11 }
  0x59   :  { %v561_v8 = vpop.eup %560  ;;  %v135_v9 = vadd.f32 %v134_v4, %v124_v1  ;;  %v196_v10 = vadd.f32 %v195_v7, %v193_v6  ;;  %v203_v11 = vstv %s482_s12  ;;  %s488_s18 = sld [smem:[#allocation7 + $0xe]] }
  0x5a   :  { %v145_v12 = vmul.f32 %v561_v8, %v144_v5  ;;  %v204_v14 = vmul.f32 %v203_v11, %v747_v0  ;;  %v206_v15 = vstv %s483_s13  ;;  %s489_s19 = sld [smem:[#allocation8 + $0xe]] }
  0x5b   :  { %s790_s20 = sld [smem:[#allocation10 + $0xa]]  ;;  %570 = vtanh.f32 %v196_v10  ;;  %v166_v21 = vstv %s782_s14 }
  0x5c   :  { %v563_v16 = vpop.eup %562  ;;  %v146_v17 = vadd.f32 %v145_v12, %v135_v9  ;;  %v207_v18 = vadd.f32 %v206_v15, %v204_v14  ;;  %v214_v19 = vstv %s485_s15  ;;  %s491_s21 = sld [smem:[#allocation7 + $0xf]] }
  0x5d   :  { %v156_v20 = vmul.f32 %v563_v16, %v155_v13  ;;  %v215_v22 = vmul.f32 %v214_v19, %v747_v0  ;;  %v217_v23 = vstv %s486_s16  ;;  %s492_s22 = sld [smem:[#allocation8 + $0xf]] }
  0x5e   :  { %s794_s23 = sld [smem:[#allocation10 + $0xb]]  ;;  %572 = vtanh.f32 %v207_v18  ;;  %v177_v29 = vstv %s786_s17 }
  0x5f   :  { %v565_v24 = vpop.eup %564  ;;  %v157_v25 = vadd.f32 %v156_v20, %v146_v17  ;;  %v218_v26 = vadd.f32 %v217_v23, %v215_v22  ;;  %v225_v27 = vstv %s488_s18  ;;  %s494_s24 = sld [smem:[#allocation7 + $0x10]] }
  0x60   :  { %v167_v28 = vmul.f32 %v565_v24, %v166_v21  ;;  %v226_v30 = vmul.f32 %v225_v27, %v747_v0  ;;  %v228_v31 = vstv %s489_s19  ;;  %s495_s25 = sld [smem:[#allocation8 + $0x10]] }
  0x61   :  { %s798_s26 = sld [smem:[#allocation10 + $0xc]]  ;;  %574 = vtanh.f32 %v218_v26  ;;  %v188_v37 = vstv %s790_s20 }
  0x62   :  { %v567_v32 = vpop.eup %566  ;;  %v168_v33 = vadd.f32 %v167_v28, %v157_v25  ;;  %v229_v34 = vadd.f32 %v228_v31, %v226_v30  ;;  %v236_v35 = vstv %s491_s21  ;;  %s497_s27 = sld [smem:[#allocation7 + $0x11]] }
  0x63   :  { %v178_v36 = vmul.f32 %v567_v32, %v177_v29  ;;  %v237_v38 = vmul.f32 %v236_v35, %v747_v0  ;;  %v239_v39 = vstv %s492_s22  ;;  %s498_s2 = sld [smem:[#allocation8 + $0x11]] }
  0x64   :  { %s802_s28 = sld [smem:[#allocation10 + $0xd]]  ;;  %576 = vtanh.f32 %v229_v34  ;;  %v199_v45 = vstv %s794_s23 }
  0x65   :  { %v569_v40 = vpop.eup %568  ;;  %v179_v41 = vadd.f32 %v178_v36, %v168_v33  ;;  %v240_v42 = vadd.f32 %v239_v39, %v237_v38  ;;  %v247_v43 = vstv %s494_s24  ;;  %s500_s29 = sld [smem:[#allocation7 + $0x12]] }
  0x66   :  { %v189_v44 = vmul.f32 %v569_v40, %v188_v37  ;;  %v248_v46 = vmul.f32 %v247_v43, %v747_v0  ;;  %v250_v47 = vstv %s495_s25  ;;  %s501_s30 = sld [smem:[#allocation8 + $0x12]] }
  0x67   :  { %s806_s6 = sld [smem:[#allocation10 + $0xe]]  ;;  %578 = vtanh.f32 %v240_v42  ;;  %v210_v53 = vstv %s798_s26 }
  0x68   :  { %v571_v48 = vpop.eup %570  ;;  %v190_v49 = vadd.f32 %v189_v44, %v179_v41  ;;  %v251_v50 = vadd.f32 %v250_v47, %v248_v46  ;;  %v258_v51 = vstv %s497_s27  ;;  %s503_s7 = sld [smem:[#allocation7 + $0x13]] }
  0x69   :  { %v200_v52 = vmul.f32 %v571_v48, %v199_v45  ;;  %v259_v54 = vmul.f32 %v258_v51, %v747_v0  ;;  %v261_v55 = vstv %s498_s2  ;;  %s504_s8 = sld [smem:[#allocation8 + $0x13]] }
  0x6a   :  { %s810_s1 = sld [smem:[#allocation10 + $0xf]]  ;;  %580 = vtanh.f32 %v251_v50  ;;  %v221_v61 = vstv %s802_s28 }
  0x6b   :  { %v573_v56 = vpop.eup %572  ;;  %v201_v57 = vadd.f32 %v200_v52, %v190_v49  ;;  %v262_v58 = vadd.f32 %v261_v55, %v259_v54  ;;  %v269_v59 = vstv %s500_s29  ;;  %s506_s9 = sld [smem:[#allocation7 + $0x14]] }
  0x6c   :  { %v211_v60 = vmul.f32 %v573_v56, %v210_v53  ;;  %v270_v62 = vmul.f32 %v269_v59, %v747_v0  ;;  %v272_v63 = vstv %s501_s30  ;;  %s507_s0 = sld [smem:[#allocation8 + $0x14]] }
  0x6d   :  { %s814_s3 = sld [smem:[#allocation10 + $0x10]]  ;;  %582 = vtanh.f32 %v262_v58  ;;  %v232_v6 = vstv %s806_s6 }
  0x6e   :  { %v575_v1 = vpop.eup %574  ;;  %v212_v2 = vadd.f32 %v211_v60, %v201_v57  ;;  %v273_v3 = vadd.f32 %v272_v63, %v270_v62  ;;  %v280_v4 = vstv %s503_s7  ;;  %s509_s10 = sld [smem:[#allocation7 + $0x15]] }
  0x6f   :  { %v222_v5 = vmul.f32 %v575_v1, %v221_v61  ;;  %v281_v7 = vmul.f32 %v280_v4, %v747_v0  ;;  %v283_v8 = vstv %s504_s8  ;;  %s510_s11 = sld [smem:[#allocation8 + $0x15]] }
  0x70   :  { %s818_s12 = sld [smem:[#allocation10 + $0x11]]  ;;  %584 = vtanh.f32 %v273_v3  ;;  %v243_v14 = vstv %s810_s1 }
  0x71   :  { %v577_v9 = vpop.eup %576  ;;  %v223_v10 = vadd.f32 %v222_v5, %v212_v2  ;;  %v284_v11 = vadd.f32 %v283_v8, %v281_v7  ;;  %v291_v12 = vstv %s506_s9  ;;  %s512_s13 = sld [smem:[#allocation7 + $0x16]] }
  0x72   :  { %v233_v13 = vmul.f32 %v577_v9, %v232_v6  ;;  %v292_v15 = vmul.f32 %v291_v12, %v747_v0  ;;  %v294_v16 = vstv %s507_s0  ;;  %s513_s14 = sld [smem:[#allocation8 + $0x16]] }
  0x73   :  { %s822_s15 = sld [smem:[#allocation10 + $0x12]]  ;;  %586 = vtanh.f32 %v284_v11  ;;  %v254_v22 = vstv %s814_s3 }
  0x74   :  { %v579_v17 = vpop.eup %578  ;;  %v234_v18 = vadd.f32 %v233_v13, %v223_v10  ;;  %v295_v19 = vadd.f32 %v294_v16, %v292_v15  ;;  %v302_v20 = vstv %s509_s10  ;;  %s515_s16 = sld [smem:[#allocation7 + $0x17]] }
  0x75   :  { %v244_v21 = vmul.f32 %v579_v17, %v243_v14  ;;  %v303_v23 = vmul.f32 %v302_v20, %v747_v0  ;;  %v305_v24 = vstv %s510_s11  ;;  %s516_s17 = sld [smem:[#allocation8 + $0x17]] }
  0x76   :  { %s826_s18 = sld [smem:[#allocation10 + $0x13]]  ;;  %588 = vtanh.f32 %v295_v19  ;;  %v265_v30 = vstv %s818_s12 }
  0x77   :  { %v581_v25 = vpop.eup %580  ;;  %v245_v26 = vadd.f32 %v244_v21, %v234_v18  ;;  %v306_v27 = vadd.f32 %v305_v24, %v303_v23  ;;  %v313_v28 = vstv %s512_s13  ;;  %s518_s19 = sld [smem:[#allocation7 + $0x18]] }
  0x78   :  { %v255_v29 = vmul.f32 %v581_v25, %v254_v22  ;;  %v314_v31 = vmul.f32 %v313_v28, %v747_v0  ;;  %v316_v32 = vstv %s513_s14  ;;  %s519_s20 = sld [smem:[#allocation8 + $0x18]] }
  0x79   :  { %s830_s21 = sld [smem:[#allocation10 + $0x14]]  ;;  %590 = vtanh.f32 %v306_v27  ;;  %v276_v38 = vstv %s822_s15 }
  0x7a   :  { %v583_v33 = vpop.eup %582  ;;  %v256_v34 = vadd.f32 %v255_v29, %v245_v26  ;;  %v317_v35 = vadd.f32 %v316_v32, %v314_v31  ;;  %v324_v36 = vstv %s515_s16  ;;  %s521_s22 = sld [smem:[#allocation7 + $0x19]] }
  0x7b   :  { %v266_v37 = vmul.f32 %v583_v33, %v265_v30  ;;  %v325_v39 = vmul.f32 %v324_v36, %v747_v0  ;;  %v327_v40 = vstv %s516_s17  ;;  %s522_s23 = sld [smem:[#allocation8 + $0x19]] }
  0x7c   :  { %s834_s24 = sld [smem:[#allocation10 + $0x15]]  ;;  %592 = vtanh.f32 %v317_v35  ;;  %v287_v46 = vstv %s826_s18 }
  0x7d   :  { %v585_v41 = vpop.eup %584  ;;  %v267_v42 = vadd.f32 %v266_v37, %v256_v34  ;;  %v328_v43 = vadd.f32 %v327_v40, %v325_v39  ;;  %v335_v44 = vstv %s518_s19  ;;  %s524_s25 = sld [smem:[#allocation7 + $0x1a]] }
  0x7e   :  { %v277_v45 = vmul.f32 %v585_v41, %v276_v38  ;;  %v336_v47 = vmul.f32 %v335_v44, %v747_v0  ;;  %v338_v48 = vstv %s519_s20  ;;  %s525_s26 = sld [smem:[#allocation8 + $0x1a]]  ;;  %s704_s20 = smov [#allocation11]  }
  0x7f   :  { %s838_s27 = sld [smem:[#allocation10 + $0x16]]  ;;  %594 = vtanh.f32 %v328_v43  ;;  %v298_v54 = vstv %s830_s21  ;;  %s438_s21 = sshll.u32 %s704_s20, 4  ;;  %s439_s21 = int_to_ptr.vmem [resolvable:$true] %s438_s21 }
  0x80   :  { %v587_v49 = vpop.eup %586  ;;  %v278_v50 = vadd.f32 %v277_v45, %v267_v42  ;;  %v339_v51 = vadd.f32 %v338_v48, %v336_v47  ;;  %v346_v52 = vstv %s521_s22  ;;  %s527_s2 = sld [smem:[#allocation7 + $0x1b]]  ;;  %s672_s22 = scalar_lea.vmem %s439_s21, 128 }
  0x81   :  { %v288_v53 = vmul.f32 %v587_v49, %v287_v46  ;;  %v347_v55 = vmul.f32 %v346_v52, %v747_v0  ;;  %v349_v56 = vstv %s522_s23  ;;  %s528_s28 = sld [smem:[#allocation8 + $0x1b]]  ;;  %p673_p6 = scmp.ne.s32.totalorder %s439_s21, %s672_s22 }
  0x82   :  { %s842_s29 = sld [smem:[#allocation10 + $0x17]]  ;;  %596 = vtanh.f32 %v339_v51  ;;  %v309_v62 = vstv %s834_s24  ;;  %p677_p7 = scmp.lt.s32.totalorder %s439_s21, %s439_s21 }
  0x83   :  { %v589_v57 = vpop.eup %588  ;;  %v289_v58 = vadd.f32 %v288_v53, %v278_v50  ;;  %v350_v59 = vadd.f32 %v349_v56, %v347_v55  ;;  %v357_v60 = vstv %s524_s25  ;;  %s530_s30 = sld [smem:[#allocation7 + $0x1c]]  ;;  %p678_p8 = scmp.lt.s32.totalorder %s672_s22, %s672_s22 }
  0x84   :  { %v299_v61 = vmul.f32 %v589_v57, %v298_v54  ;;  %v358_v63 = vmul.f32 %v357_v60, %v747_v0  ;;  %v360_v1 = vstv %s525_s26  ;;  %s531_s6 = sld [smem:[#allocation8 + $0x1c]] }
  0x85   :  { %s846_s7 = sld [smem:[#allocation10 + $0x18]]  ;;  %598 = vtanh.f32 %v350_v59  ;;  %v320_v7 = vstv %s838_s27  ;;  %p679_p9 = por %p678_p8, %p677_p7 }
  0x86   :  { %v591_v2 = vpop.eup %590  ;;  %v300_v3 = vadd.f32 %v299_v61, %v289_v58  ;;  %v361_v4 = vadd.f32 %v360_v1, %v358_v63  ;;  %v368_v5 = vstv %s527_s2  ;;  %s533_s8 = sld [smem:[#allocation7 + $0x1d]] }
  0x87   :  { %v310_v6 = vmul.f32 %v591_v2, %v309_v62  ;;  %v369_v8 = vmul.f32 %v368_v5, %v747_v0  ;;  %v371_v9 = vstv %s528_s28  ;;  %s534_s1 = sld [smem:[#allocation8 + $0x1d]]  ;;  %v423_v2 = vstv %s875_s4  ;;  %p680_p10 = pnand %p679_p9, %p673_p6 }
  0x88   :  { %s850_s9 = sld [smem:[#allocation10 + $0x19]]  ;;  %600 = vtanh.f32 %v361_v4  ;;  %v331_v15 = vstv %s842_s29 }
  0x89   :  { %v593_v10 = vpop.eup %592  ;;  %v311_v11 = vadd.f32 %v310_v6, %v300_v3  ;;  %v372_v12 = vadd.f32 %v371_v9, %v369_v8  ;;  %v379_v13 = vstv %s530_s30  ;;  %s536_s0 = sld [smem:[#allocation7 + $0x1e]] }
  0x8a   :  { %v321_v14 = vmul.f32 %v593_v10, %v320_v7  ;;  %v380_v16 = vmul.f32 %v379_v13, %v747_v0  ;;  %v382_v17 = vstv %s531_s6  ;;  %s537_s3 = sld [smem:[#allocation8 + $0x1e]] }
  0x8b   :  { %s854_s10 = sld [smem:[#allocation10 + $0x1a]]  ;;  %602 = vtanh.f32 %v372_v12  ;;  %v342_v23 = vstv %s846_s7 }
  0x8c   :  { %v595_v18 = vpop.eup %594  ;;  %v322_v19 = vadd.f32 %v321_v14, %v311_v11  ;;  %v383_v20 = vadd.f32 %v382_v17, %v380_v16  ;;  %v390_v21 = vstv %s533_s8  ;;  %s539_s11 = sld [smem:[#allocation7 + $0x1f]] }
  0x8d   :  { %v332_v22 = vmul.f32 %v595_v18, %v331_v15  ;;  %v391_v24 = vmul.f32 %v390_v21, %v747_v0  ;;  %v393_v25 = vstv %s534_s1  ;;  %s540_s12 = sld [smem:[#allocation8 + $0x1f]] }
  0x8e   :  { %s858_s13 = sld [smem:[#allocation10 + $0x1b]]  ;;  %604 = vtanh.f32 %v383_v20  ;;  %v353_v31 = vstv %s850_s9 }
  0x8f   :  { %v597_v26 = vpop.eup %596  ;;  %v333_v27 = vadd.f32 %v332_v22, %v322_v19  ;;  %v394_v28 = vadd.f32 %v393_v25, %v391_v24  ;;  %v401_v29 = vstv %s536_s0  ;;  %s532_s14 = sld [smem:[#allocation10 + $0x1c]] }
  0x90   :  { %v343_v30 = vmul.f32 %v597_v26, %v342_v23  ;;  %v402_v32 = vmul.f32 %v401_v29, %v747_v0  ;;  %v404_v33 = vstv %s537_s3  ;;  %s535_s15 = sld [smem:[#allocation10 + $0x1d]] }
  0x91   :  { %606 = vtanh.f32 %v394_v28  ;;  %v364_v39 = vstv %s854_s10  ;;  %s538_s16 = sld [smem:[#allocation10 + $0x1e]] }
  0x92   :  { %v599_v34 = vpop.eup %598  ;;  %v344_v35 = vadd.f32 %v343_v30, %v333_v27  ;;  %v405_v36 = vadd.f32 %v404_v33, %v402_v32  ;;  %v412_v37 = vstv %s539_s11  ;;  %s541_s17 = sld [smem:[#allocation10 + $0x1f]] }
  0x93   :  { %v354_v38 = vmul.f32 %v599_v34, %v353_v31  ;;  %v413_v40 = vmul.f32 %v412_v37, %v747_v0  ;;  %v415_v41 = vstv %s540_s12 }
  0x94   :  { %608 = vtanh.f32 %v405_v36  ;;  %v375_v46 = vstv %s858_s13 }
  0x95   :  { %v601_v42 = vpop.eup %600  ;;  %v355_v43 = vadd.f32 %v354_v38, %v344_v35  ;;  %v416_v44 = vadd.f32 %v415_v41, %v413_v40  ;;  %v386_v50 = vstv %s532_s14 }
  0x96   :  { %v365_v45 = vmul.f32 %v601_v42, %v364_v39  ;;  %v397_v54 = vstv %s535_s15 }
  0x97   :  { %610 = vtanh.f32 %v416_v44  ;;  %v408_v57 = vstv %s538_s16 }
  0x98   :  { %v603_v47 = vpop.eup %602  ;;  %v366_v48 = vadd.f32 %v365_v45, %v355_v43  ;;  %v419_v61 = vstv %s541_s17 }
  0x99   :  { %v376_v49 = vmul.f32 %v603_v47, %v375_v46 }
  0x9b   :  { %v605_v51 = vpop.eup %604  ;;  %v377_v52 = vadd.f32 %v376_v49, %v366_v48 }
  0x9c   :  { %v387_v53 = vmul.f32 %v605_v51, %v386_v50 }
  0x9e   :  { %v607_v0 = vpop.eup %606  ;;  %v388_v55 = vadd.f32 %v387_v53, %v377_v52 }
  0x9f   :  { %v398_v56 = vmul.f32 %v607_v0, %v397_v54 }
  0xa1   :  { %v609_v58 = vpop.eup %608  ;;  %v399_v59 = vadd.f32 %v398_v56, %v388_v55 }
  0xa2   :  { %v409_v60 = vmul.f32 %v609_v58, %v408_v57 }
  0xa4   :  { %v611_v62 = vpop.eup %610  ;;  %v410_v63 = vadd.f32 %v409_v60, %v399_v59 }
  0xa5   :  { %v420_v1 = vmul.f32 %v611_v62, %v419_v61 }
  0xa7   :  { %v421_v3 = vadd.f32 %v420_v1, %v410_v63 }
  0xa9   :  { %v424_v4 = vadd.f32 %v423_v2, %v421_v3 }
  0xab   :  { %v542_v5 = vmul.f32 -1.442695, %v424_v4 }
  0xad   :  { %612 = vpow2.f32 %v542_v5 }
  0xba   :  { %v613_v6 = vpop.eup %612 }
  0xbb   :  { %v428_v7 = vadd.f32 1.0, %v613_v6 }
  0xbd   :  { %614 = vrcp.f32 %v428_v7 }
  0xca   :  { %v615_v8 = vpop.eup %614 }
  0xcb   :  { %431 = vst [vmem:[#allocation11] sm:$0xff] %v615_v8 }
  0xcc   :  { %683 = shalt.err (!%p680_p10)
}
  0xcd   :  { %441 = dma.vmem_to_hbm [thread:$0]  %s439_s21, 128, %s876_s5, [#allocation5]  }
  0xce   :  { %698 = dma.done.wait [#allocation5], 128  }
  0xcf   :  { %699 = vsyncadd [#allocation5], 4294967168 }
  0xd0   :  { %445 = vsyncpa [#allocation4], 1 }
  0xd1   :  { %446 = vsyncpa [#allocation5], 1 }
  0xd2   :  { %447 = vsyncpa [#allocation6], 1 }
  0xd3   :  { %448 = vsyncpa [#allocation9], 1 }

</bundles_post_ra>
